<compile_context>
chip_gen: v6e
topology: v6e:2x2x1
jax: 0.10.0
libtpu: 0.0.40
codegen_flags: <defaults>
</compile_context>

<pallas_src>
import jax
import jax.numpy as jnp
from jax.experimental import pallas as pl
from jax.experimental.pallas import tpu as pltpu

IN_FEATURES = 10
OUT_FEATURES = 40
HALF = OUT_FEATURES // 2          # 20
PAD = 128                         # lane-aligned slab per half
PACKED = 2 * PAD                  # 256
BN_EPS = 1e-5


def _linear_bn_split_act_kernel(x_ref, wt_ref, gb_ref, o_ref):
    x = x_ref[...]                 # (B, 10)   f32
    wt = wt_ref[...]               # (10, 256) half-1 in lanes [0,20), half-2 in [128,148)
    gb = gb_ref[...]               # (2, 256)  row 0 = gamma, row 1 = beta (padded lanes = 0)
    gamma = gb[0:1, :]
    beta = gb[1:2, :]

    # Linear without bias: training-mode BN subtracts the batch mean, so the
    # Linear bias cancels exactly -> skip the full-block add.
    z = jnp.dot(x, wt, preferred_element_type=jnp.float32)            # (B, 256)

    # Two-pass batch statistics (biased variance) — numerically robust; at this
    # size the extra full-block subtract is free (kernel is overhead-bound).
    n_inv = 1.0 / z.shape[0]
    mean = jnp.sum(z, axis=0, keepdims=True) * n_inv                   # (1, 256)
    diff = z - mean                                                    # (B, 256)
    var = jnp.sum(diff * diff, axis=0, keepdims=True) * n_inv          # (1, 256)

    # Fold gamma into a per-feature scale; padded lanes have gamma == 0 and
    # all-zero weight columns -> output exactly 0 there.
    scale = gamma * jax.lax.rsqrt(var + BN_EPS)                        # (1, 256)
    yhat = diff * scale + beta                                         # (B, 256)

    # chunk(2, dim=1): halves live in disjoint 128-lane slabs -> free vreg split.
    a1 = jnp.maximum(yhat[:, :PAD], 0.0)      # ReLU half (VPU)
    a2 = jnp.tanh(yhat[:, PAD:])              # Tanh half (EUP)
    o_ref[...] = a1 + a2                      # (B, 128): lane-dense, unmasked store


def _pack_lanes(m):
    """Pack (..., 40) -> (..., 256) with half k in lanes [k*128, k*128 + 20)."""
    m = jnp.asarray(m, jnp.float32)
    out = jnp.zeros(m.shape[:-1] + (PACKED,), jnp.float32)
    out = out.at[..., 0:HALF].set(m[..., 0:HALF])
    out = out.at[..., PAD:PAD + HALF].set(m[..., HALF:OUT_FEATURES])
    return out


def pack_params(w, gamma, beta):
    """Precompute packed kernel operands ONCE (outside the per-batch hot path)."""
    wt_packed = _pack_lanes(jnp.asarray(w, jnp.float32).T)              # (10, 256)
    gb_packed = _pack_lanes(jnp.stack([jnp.asarray(gamma, jnp.float32),
                                       jnp.asarray(beta, jnp.float32)]))  # (2, 256)
    return wt_packed, gb_packed


@jax.jit
def linear_bn_split_act_packed(x, wt_packed, gb_packed):
    """Per-batch apply with prepacked params. Returns (B, 20) f32."""
    x = jnp.asarray(x, jnp.float32)
    B = x.shape[0]
    out_padded = pl.pallas_call(
        _linear_bn_split_act_kernel,
        out_shape=jax.ShapeDtypeStruct((B, PAD), jnp.float32),
        in_specs=[
            pl.BlockSpec(memory_space=pltpu.MemorySpace.VMEM),
            pl.BlockSpec(memory_space=pltpu.MemorySpace.VMEM),
            pl.BlockSpec(memory_space=pltpu.MemorySpace.VMEM),
        ],
        out_specs=pl.BlockSpec(memory_space=pltpu.MemorySpace.VMEM),
    )(x, wt_packed, gb_packed)
    # Lane crop fuses into the jitted graph (no separate dispatch / HBM roundtrip).
    return out_padded[:, :HALF]


@jax.jit
def linear_bn_split_act(x, w, b, gamma, beta):
    """Convenience one-shot path (packing fused under jit).

    `b` is accepted for API parity with nn.Linear but is unused: under
    training-mode BatchNorm the bias cancels exactly. If this kernel is ever
    reused with eval-mode BN (running stats), the bias must be re-added.
    """
    del b
    wt_packed, gb_packed = pack_params(w, gamma, beta)
    return linear_bn_split_act_packed(x, wt_packed, gb_packed)


def _reference(x, w, b, gamma, beta):
    # Mirrors PyTorch: Linear(+bias) -> train-mode BN (biased var) -> chunk -> relu/tanh -> add
    y = x @ w.T + b
    mean = y.mean(axis=0, keepdims=True)
    var = ((y - mean) ** 2).mean(axis=0, keepdims=True)
    yhat = (y - mean) / jnp.sqrt(var + BN_EPS) * gamma + beta
    t1, t2 = yhat[:, :HALF], yhat[:, HALF:]
    return jnp.maximum(t1, 0.0) + jnp.tanh(t2)


if __name__ == "__main__":
    key = jax.random.PRNGKey(0)
    kx, kw, kb, kg, kbeta = jax.random.split(key, 5)

    B = 8
    x = jax.random.normal(kx, (B, IN_FEATURES), dtype=jnp.float32)

    # Deterministic parameter init (shapes of nn.Linear(10,40) / nn.BatchNorm1d(40)).
    bound = 1.0 / (IN_FEATURES ** 0.5)
    w = jax.random.uniform(kw, (OUT_FEATURES, IN_FEATURES), jnp.float32, -bound, bound)
    b = jax.random.uniform(kb, (OUT_FEATURES,), jnp.float32, -bound, bound)
    gamma = 1.0 + 0.1 * jax.random.normal(kg, (OUT_FEATURES,), dtype=jnp.float32)
    beta = 0.1 * jax.random.normal(kbeta, (OUT_FEATURES,), dtype=jnp.float32)

    # Hot-path usage: pack parameters once, then call the jitted apply per batch.
    wt_packed, gb_packed = jax.block_until_ready(pack_params(w, gamma, beta))
    out = jax.block_until_ready(linear_bn_split_act_packed(x, wt_packed, gb_packed))

    # Convenience one-shot path (packing + kernel + crop fused under a single jit).
    out2 = jax.block_until_ready(linear_bn_split_act(x, w, b, gamma, beta))

    ref = _reference(x, w, b.reshape(1, -1), gamma.reshape(1, -1), beta.reshape(1, -1))
    assert out.shape == (B, HALF)
    assert jnp.allclose(out, ref, atol=2e-5, rtol=2e-5), "mismatch vs JAX reference (packed path)"
    assert jnp.allclose(out2, ref, atol=2e-5, rtol=2e-5), "mismatch vs JAX reference (one-shot path)"

    print("KERNEL_OK")
</pallas_src>

<mosaic_0001>
module attributes {stable_mosaic.version = 11 : i64} {
  func.func @_linear_bn_split_act_kernel(%arg0: memref<8x10xf32, #tpu.memory_space<vmem>>, %arg1: memref<10x256xf32, #tpu.memory_space<vmem>>, %arg2: memref<2x256xf32, #tpu.memory_space<vmem>>, %arg3: memref<8x128xf32, #tpu.memory_space<vmem>>) attributes {dimension_semantics = [], scalar_prefetch = 0 : i64, scratch_operands = 0 : i64, tpu.core_type = #tpu.core_type<tc>} {
    %c0 = arith.constant 0 : index
    %c0_0 = arith.constant 0 : index
    %0 = vector.load %arg0[%c0, %c0_0] : memref<8x10xf32, #tpu.memory_space<vmem>>, vector<8x10xf32>
    %c0_1 = arith.constant 0 : index
    %c0_2 = arith.constant 0 : index
    %1 = vector.load %arg1[%c0_1, %c0_2] : memref<10x256xf32, #tpu.memory_space<vmem>>, vector<10x256xf32>
    %c0_3 = arith.constant 0 : index
    %c0_4 = arith.constant 0 : index
    %2 = vector.load %arg2[%c0_3, %c0_4] : memref<2x256xf32, #tpu.memory_space<vmem>>, vector<2x256xf32>
    %3 = vector.extract_strided_slice %2 {offsets = [0, 0], sizes = [1, 256], strides = [1, 1]} : vector<2x256xf32> to vector<1x256xf32>
    %4 = vector.extract_strided_slice %2 {offsets = [1, 0], sizes = [1, 256], strides = [1, 1]} : vector<2x256xf32> to vector<1x256xf32>
    %cst = arith.constant dense<0.000000e+00> : vector<8x256xf32>
    %5 = tpu.matmul %0, %1, %cst {dimension_numbers = #tpu.dot_dimension_numbers<[1], [0], [0], [1], [0, 0, 1, 1], [], []>} : vector<8x10xf32>, vector<10x256xf32>, vector<8x256xf32> -> vector<8x256xf32>
    %cst_5 = arith.constant dense<0.000000e+00> : vector<256xf32>
    %6 = vector.multi_reduction <add>, %5, %cst_5 [0] : vector<8x256xf32> to vector<256xf32>
    %7 = vector.shape_cast %6 : vector<256xf32> to vector<1x256xf32>
    %cst_6 = arith.constant 1.250000e-01 : f32
    %8 = vector.broadcast %cst_6 : f32 to vector<1x256xf32>
    %9 = arith.mulf %7, %8 : vector<1x256xf32>
    %10 = vector.broadcast %9 : vector<1x256xf32> to vector<8x256xf32>
    %11 = arith.subf %5, %10 : vector<8x256xf32>
    %12 = arith.mulf %11, %11 : vector<8x256xf32>
    %cst_7 = arith.constant dense<0.000000e+00> : vector<256xf32>
    %13 = vector.multi_reduction <add>, %12, %cst_7 [0] : vector<8x256xf32> to vector<256xf32>
    %14 = vector.shape_cast %13 : vector<256xf32> to vector<1x256xf32>
    %cst_8 = arith.constant 1.250000e-01 : f32
    %15 = vector.broadcast %cst_8 : f32 to vector<1x256xf32>
    %16 = arith.mulf %14, %15 : vector<1x256xf32>
    %cst_9 = arith.constant 9.99999974E-6 : f32
    %17 = vector.broadcast %cst_9 : f32 to vector<1x256xf32>
    %18 = arith.addf %16, %17 : vector<1x256xf32>
    %19 = math.rsqrt %18 : vector<1x256xf32>
    %20 = arith.mulf %3, %19 : vector<1x256xf32>
    %21 = vector.broadcast %20 : vector<1x256xf32> to vector<8x256xf32>
    %22 = arith.mulf %11, %21 : vector<8x256xf32>
    %23 = vector.broadcast %4 : vector<1x256xf32> to vector<8x256xf32>
    %24 = arith.addf %22, %23 : vector<8x256xf32>
    %25 = vector.extract_strided_slice %24 {offsets = [0, 0], sizes = [8, 128], strides = [1, 1]} : vector<8x256xf32> to vector<8x128xf32>
    %cst_10 = arith.constant 0.000000e+00 : f32
    %26 = vector.broadcast %cst_10 : f32 to vector<8x128xf32>
    %27 = arith.maximumf %25, %26 : vector<8x128xf32>
    %28 = vector.extract_strided_slice %24 {offsets = [0, 128], sizes = [8, 128], strides = [1, 1]} : vector<8x256xf32> to vector<8x128xf32>
    %29 = math.tanh %28 : vector<8x128xf32>
    %30 = arith.addf %27, %29 : vector<8x128xf32>
    %c0_11 = arith.constant 0 : index
    %c0_12 = arith.constant 0 : index
    %31 = vector.load %arg3[%c0_11, %c0_12] : memref<8x128xf32, #tpu.memory_space<vmem>>, vector<8x128xf32>
    tpu.vector_store %arg3[%c0_11, %c0_12], %30 {strides = array<i32>} : memref<8x128xf32, #tpu.memory_space<vmem>>, vector<8x128xf32>,
    return
  }
}

</mosaic_0001>

<bundles_post_ra>
// kernel: linear_bn_split_act_packed.1
= control target key start
LH: loop header
LB: loop body
LE: loop exit
PB: predicated region body
PF: predicated region fallthrough
CT: control target
= control target key end

     0   :  { %8 = vsyncpa [#allocation3], 0  ;;  %s393_s0 = inlined_call_operand.hbm [shape: f32[8,10], index: 0, kind: input, shape index: {}]   ;;  %s394_s1 = inlined_call_operand.hbm [shape: f32[10,256], index: 1, kind: input, shape index: {}]   ;;  %s395_s2 = inlined_call_operand.hbm [shape: f32[2,256], index: 2, kind: input, shape index: {}]   ;;  %s396_s3 = inlined_call_operand.hbm [shape: f32[8,128], index: 3, kind: output, shape index: {}]  }
   0x1   :  { %9 = vsyncpa [#allocation6], 0 }
   0x2   :  { %10 = vsyncpa [#allocation4], 0  ;;  %s353_s12 = smov [#allocation5]  }
   0x3   :  { %s26_s13 = sshll.u32 %s353_s12, 4  ;;  %s27_s13 = int_to_ptr.vmem [resolvable:$true] %s26_s13 }
   0x4   :  { %s275_s14 = scalar_lea.vmem %s27_s13, 512  ;;  %p280_p1 = scmp.lt.s32.totalorder %s27_s13, %s27_s13 }
   0x5   :  { %p276_p0 = scmp.ne.s32.totalorder %s27_s13, %s275_s14  ;;  %p281_p2 = scmp.lt.s32.totalorder %s275_s14, %s275_s14 }
   0x7   :  { %p282_p3 = por %p281_p2, %p280_p1 }
   0x9   :  { %p283_p4 = pnand %p282_p3, %p276_p0 }
   0xb   :  { %286 = shalt.err (!%p283_p4)
}
   0xc   :  { %s354_s15 = smov 256   ;;  %s355_s16 = smov 16  }
   0xd   :  { %32 = dma.hbm_to_vmem [thread:$0]  %s394_s1, 512, %s27_s13, [#allocation6], %s354_s15, %s354_s15, %s355_s16  }
   0xe   :  { %s356_s19 = smov [#allocation2]   ;;  %s357_s21 = smov [#allocation7]  }
   0xf   :  { %s17_s20 = sshll.u32 %s356_s19, 4  ;;  %s39_s22 = sshll.u32 %s357_s21, 4  ;;  %s18_s20 = int_to_ptr.vmem [resolvable:$true] %s17_s20  ;;  %s40_s22 = int_to_ptr.vmem [resolvable:$true] %s39_s22 }
  0x10   :  { %s295_s23 = scalar_lea.vmem %s18_s20, 128  ;;  %p300_p6 = scmp.lt.s32.totalorder %s18_s20, %s18_s20 }
  0x11   :  { %p296_p5 = scmp.ne.s32.totalorder %s18_s20, %s295_s23  ;;  %p301_p7 = scmp.lt.s32.totalorder %s295_s23, %s295_s23 }
  0x13   :  { %p302_p8 = por %p301_p7, %p300_p6 }
  0x15   :  { %p303_p9 = pnand %p302_p8, %p296_p5 }
  0x17   :  { %306 = shalt.err (!%p303_p9)
}
  0x18   :  { %20 = dma.hbm_to_vmem [thread:$0]  %s393_s0, 128, %s18_s20, [#allocation3]  }
  0x19   :  { %s315_s26 = scalar_lea.vmem %s40_s22, 64  ;;  %p320_p11 = scmp.lt.s32.totalorder %s40_s22, %s40_s22 }
  0x1a   :  { %p316_p10 = scmp.ne.s32.totalorder %s40_s22, %s315_s26  ;;  %p321_p12 = scmp.lt.s32.totalorder %s315_s26, %s315_s26 }
  0x1c   :  { %p322_p13 = por %p321_p12, %p320_p11 }
  0x1e   :  { %p323_p0 = pnand %p322_p13, %p316_p10 }
  0x20   :  { %326 = shalt.err (!%p323_p0)
}
  0x21   :  { %42 = dma.hbm_to_vmem [thread:$0]  %s395_s2, 64, %s40_s22, [#allocation6]  }
  0x22   :  { %347 = dma.done.wait [#allocation3], 128  }
  0x23   :  { %348 = vsyncadd [#allocation3], 4294967168 }
  0x24   :  { %349 = dma.done.wait [#allocation6], 576  }
  0x25   :  { %350 = vsyncadd [#allocation6], 4294966720  ;;  %v358_v0 = vmov 0.0   ;;  %vm62_vm0 = vcmask 1041408   ;;  %v56_v1 = vld [vmem:[#allocation5 + $0x18] sm:$0x3]  ;;  %v182_v44 = vlaneseq }
  0x26   :  { %133 = vmatprep.mubr.f32.mxu0 %v358_v0  ;;  %v55_v2 = vld [vmem:[#allocation5 + $0x10] sm:$0x3]  ;;  %v54_v3 = vld [vmem:[#allocation5 + $0x8] sm:$0xff]  ;;  %250 = vmatprep.subr.msk.mxu0 %vm62_vm0, %v56_v1  ;;  %v53_v4 = vld [vmem:[#allocation5] sm:$0xff]  ;;  %vm58_vm1 = vcmask 80896   ;;  %s360_s0 = smov [#allocation8]  }
  0x27   :  { %251 = vmatpush1.msk.msra.mxu0 %vm62_vm0, %v55_v2  ;;  %v52_v5 = vld [vmem:[#allocation2] sm:$0xff]  ;;  %v359_v42 = vmov 1983009808   ;;  %v183_v46 = vshrl.u32 %v182_v44, 7  ;;  %v57_v52 = vld [vmem:[#allocation7] sm:$0xf] }
  0x28   :  { %99 = vmatprep.subr.mxu0 %v54_v3  ;;  %v180_v43 = vunpack.c.l.s4 %v359_v42  ;;  %s240_s2 = sshll.u32 %s360_s0, 4  ;;  %s241_s2 = int_to_ptr.vmem [resolvable:$true] %s240_s2 }
  0x29   :  { %100 = vmatpush1.msra.mxu0 %v53_v4  ;;  %v216_v51 = vsub.s32 3, %v183_v46  ;;  %v195_v54 = vsub.s32 2, %v183_v46  ;;  %v191_v57 = vsub.s32 0, %v183_v46  ;;  %v212_v59 = vsub.s32 1, %v183_v46  ;;  %s327_s28 = scalar_lea.vmem %s241_s2, 128  ;;  %p332_p2 = scmp.lt.s32.totalorder %s241_s2, %s241_s2 }
  0x2a   :  { %252 = vmatmul.mubr.msk.f32.vlgmr.msra.gmra.mxu0 %vm58_vm1, %v52_v5  ;;  %v181_v45 = vunpack.c.0.s8 %v180_v43  ;;  %p328_p1 = scmp.ne.s32.totalorder %s241_s2, %s327_s28  ;;  %p333_p3 = scmp.lt.s32.totalorder %s327_s28, %s327_s28 }
  0x2b   :  { %v217_v56 = vrot.slane %v57_v52, %v216_v51  ;;  %v213_v2 = vrot.slane %v57_v52, %v212_v59 }
  0x2c   :  { %v184_v48 = vsub.s32 %v181_v45, %v183_v46  ;;  %p334_p4 = por %p333_p3, %p332_p2 }
  0x2d   :  { %v227_v61 = vrot.slane %v217_v56, %v212_v59  ;;  %v223_v4 = vrot.slane %v213_v2, %v212_v59 }
  0x2e   :  { %p335_p5 = pnand %p334_p4, %p328_p1 }
  0xea   :  { %v135_v6 = vpop.f32.mrf.mxu0 }
  0xeb   :  { %v140_v7 = vrot.slane %v135_v6, 4 }
  0xec   :  { %v137_v8 = vpop.f32.mrf.mxu0 }
  0xed   :  { %v141_v9 = vadd.f32 %v140_v7, %v135_v6  ;;  %v146_v10 = vrot.slane %v137_v8, 4 }
  0xef   :  { %v142_v11 = vrot.slane %v141_v9, 2  ;;  %v147_v12 = vadd.f32 %v146_v10, %v137_v8 }
  0xf1   :  { %v143_v13 = vadd.f32 %v142_v11, %v141_v9  ;;  %v148_v14 = vrot.slane %v147_v12, 2 }
  0xf3   :  { %v144_v15 = vrot.slane %v143_v13, 1  ;;  %v149_v16 = vadd.f32 %v148_v14, %v147_v12 }
  0xf5   :  { %v145_v17 = vadd.f32 %v144_v15, %v143_v13  ;;  %v150_v18 = vrot.slane %v149_v16, 1 }
  0xf7   :  { %v152_v19 = vmul.f32 0.125, %v145_v17  ;;  %v151_v20 = vadd.f32 %v150_v18, %v149_v16 }
  0xf9   :  { %v154_v21 = vsub.f32 %v135_v6, %v152_v19  ;;  %v153_v22 = vmul.f32 0.125, %v151_v20 }
  0xfb   :  { %v156_v23 = vmul.f32 %v154_v21, %v154_v21  ;;  %v155_v24 = vsub.f32 %v137_v8, %v153_v22 }
  0xfd   :  { %v158_v25 = vrot.slane %v156_v23, 4  ;;  %v157_v26 = vmul.f32 %v155_v24, %v155_v24 }
  0xff   :  { %v159_v27 = vadd.f32 %v158_v25, %v156_v23  ;;  %v164_v28 = vrot.slane %v157_v26, 4 }
 0x101   :  { %v160_v29 = vrot.slane %v159_v27, 2  ;;  %v165_v30 = vadd.f32 %v164_v28, %v157_v26 }
 0x103   :  { %v161_v31 = vadd.f32 %v160_v29, %v159_v27  ;;  %v166_v32 = vrot.slane %v165_v30, 2 }
 0x105   :  { %v162_v33 = vrot.slane %v161_v31, 1  ;;  %v167_v34 = vadd.f32 %v166_v32, %v165_v30 }
 0x107   :  { %v163_v35 = vadd.f32 %v162_v33, %v161_v31  ;;  %v168_v36 = vrot.slane %v167_v34, 1 }
 0x109   :  { %v170_v37 = vmul.f32 0.125, %v163_v35  ;;  %v169_v38 = vadd.f32 %v168_v36, %v167_v34 }
 0x10b   :  { %v172_v39 = vadd.f32 1e-05, %v170_v37  ;;  %v171_v40 = vmul.f32 0.125, %v169_v38 }
 0x10d   :  { %v173_v41 = vadd.f32 1e-05, %v171_v40  ;;  %261 = vrsqrt.f32 %v172_v39 }
 0x10f   :  { %263 = vrsqrt.f32 %v173_v41 }
 0x11a   :  { %v262_v47 = vpop.eup %261 }
 0x11c   :  { %v264_v49 = vpop.eup %263 }
 0x11d   :  { %v178_v50 = vcombine.low %v262_v47, %v264_v49 }
 0x11f   :  { %v185_v53 = vrot.slane %v178_v50, %v184_v48 }
 0x121   :  { %v187_v55 = vmul.f32 %v185_v53, %v57_v52 }
 0x123   :  { %v196_v58 = vrot.slane %v187_v55, %v195_v54  ;;  %v192_v62 = vrot.slane %v187_v55, %v191_v57 }
 0x125   :  { %v206_v60 = vrot.slane %v196_v58, %v191_v57  ;;  %v202_v1 = vrot.slane %v192_v62, %v191_v57 }
 0x127   :  { %v208_v63 = vmul.f32 %v206_v60, %v155_v24  ;;  %v207_v3 = vmul.f32 %v202_v1, %v154_v21 }
 0x129   :  { %v229_v0 = vadd.f32 %v227_v61, %v208_v63  ;;  %v228_v5 = vadd.f32 %v223_v4, %v207_v3 }
 0x12b   :  { %265 = vtanh.f32 %v229_v0  ;;  %v230_v6 = vmax.f32 %v228_v5, 0.0 }
 0x138   :  { %v266_v7 = vpop.eup %265 }
 0x139   :  { %v232_v8 = vadd.f32 %v266_v7, %v230_v6 }
 0x13b   :  { %233 = vst [vmem:[#allocation8] sm:$0xff] %v232_v8 }
 0x13c   :  { %338 = shalt.err (!%p335_p5)
}
 0x13d   :  { %243 = dma.vmem_to_hbm [thread:$0]  %s241_s2, 128, %s396_s3, [#allocation4]  }
 0x13e   :  { %351 = dma.done.wait [#allocation4], 128  }
 0x13f   :  { %352 = vsyncadd [#allocation4], 4294967168 }
 0x140   :  { %247 = vsyncpa [#allocation3], 1 }
 0x141   :  { %248 = vsyncpa [#allocation6], 1 }
 0x142   :  { %249 = vsyncpa [#allocation4], 1 }

</bundles_post_ra>
